<compile_context>
chip_gen: v5e
topology: v5e:2x2
jax: 0.10.0
libtpu: 0.0.40
codegen_flags: <defaults>
</compile_context>

<pallas_src>
import functools

import jax
import jax.numpy as jnp
from jax.experimental import pallas as pl
from jax.experimental.pallas import tpu as pltpu


def _round_up(a, b):
    return ((a + b - 1) // b) * b


def _linear_noise_relu_kernel(xt_ref, w_ref, noise_ref, ot_ref):
    # xt_ref:    (K, tm)  f32  input block, batch on the lane axis
    # w_ref:     (N, K)   f32  torch-style Linear weight (tiny, whole)
    # noise_ref: (N, 1)   f32  per-output-feature noise column
    # ot_ref:    (N, tm)  f32  transposed output block (lane-dense stores)
    K = xt_ref.shape[0]
    # K is tiny (=2): unrolled VPU broadcast-FMAs instead of an MXU matmul.
    acc = w_ref[:, 0:1] * xt_ref[0:1, :]              # (N, 1)*(1, tm) -> (N, tm)
    for k in range(1, K):
        acc = acc + w_ref[:, k:k + 1] * xt_ref[k:k + 1, :]
    acc = acc + noise_ref[...]                        # broadcast (N, 1) over lanes
    ot_ref[...] = jnp.maximum(acc, 0.0)               # relu


@functools.partial(jax.jit, static_argnames=("tm",))
def linear_noise_relu(x, w, noise, *, tm=512):
    """x: (M, K), w: (N, K) torch Linear weight, noise: (N,). Returns (M, N)."""
    M, K = x.shape
    N = w.shape[0]

    tm_eff = min(tm, _round_up(M, 128))               # lane-multiple tile of M
    Mp = _round_up(M, tm_eff)

    xt = x.T                                          # (K, M): batch on lanes
    if Mp != M:
        xt = jnp.pad(xt, ((0, 0), (0, Mp - M)))
    noise_col = noise.reshape(N, 1)

    out_t = pl.pallas_call(
        _linear_noise_relu_kernel,
        out_shape=jax.ShapeDtypeStruct((N, Mp), jnp.float32),
        grid_spec=pl.GridSpec(
            grid=(Mp // tm_eff,),
            in_specs=[
                pl.BlockSpec((K, tm_eff), lambda i: (0, i)),
                pl.BlockSpec((N, K), lambda i: (0, 0)),
                pl.BlockSpec((N, 1), lambda i: (0, 0)),
            ],
            out_specs=pl.BlockSpec((N, tm_eff), lambda i: (0, i)),
        ),
        compiler_params=pltpu.CompilerParams(
            dimension_semantics=("parallel",),        # shard M across TCs (v7x)
        ),
    )(xt, w, noise_col)

    return out_t[:, :M].T                             # back to (M, N)


if __name__ == "__main__":
    key = jax.random.PRNGKey(0)
    k_x, k_w, k_n = jax.random.split(key, 3)

    # Small shapes consistent with Linear(2, 8): batch=1024, in_features=2.
    M, K, N = 1024, 2, 8
    x = jax.random.normal(k_x, (M, K), dtype=jnp.float32)

    # Deterministic "parameter init" for the Linear(2, 8, bias=False) weight,
    # stored torch-style as (out_features, in_features).
    w = jax.random.normal(k_w, (N, K), dtype=jnp.float32) * (1.0 / jnp.sqrt(K))

    # torch.randn(8) drawn per forward -> deterministic surrogate noise here.
    # TODO(synk): for true per-call randomness, generate the noise in-kernel
    # with pltpu.prng_seed + pltpu.prng_random_bits.
    noise = jax.random.normal(k_n, (N,), dtype=jnp.float32)

    out = linear_noise_relu(x, w, noise)
    jax.block_until_ready(out)

    # Reference check in plain JAX (same math).
    ref = jnp.maximum(x @ w.T + noise[None, :], 0.0)
    assert out.shape == (M, N)
    assert jnp.allclose(out, ref, atol=1e-5, rtol=1e-5)

    print("KERNEL_OK")
</pallas_src>

<mosaic_0001>
module attributes {stable_mosaic.version = 11 : i64} {
  func.func @_linear_noise_relu_kernel(%arg0: i32, %arg1: memref<2x512xf32, #tpu.memory_space<vmem>>, %arg2: memref<8x2xf32, #tpu.memory_space<vmem>>, %arg3: memref<8x1xf32, #tpu.memory_space<vmem>>, %arg4: memref<8x512xf32, #tpu.memory_space<vmem>>) attributes {dimension_semantics = [#tpu.dimension_semantics<parallel>], iteration_bounds = array<i64: 2>, scalar_prefetch = 0 : i64, scratch_operands = 0 : i64, tpu.core_type = #tpu.core_type<tc>, window_params = [{transform_indices = @transform_0, window_bounds = array<i64: 2, 512>}, {pipeline_mode = #tpu.pipeline_mode<synchronous>, transform_indices = @transform_1, window_bounds = array<i64: 8, 2>}, {pipeline_mode = #tpu.pipeline_mode<synchronous>, transform_indices = @transform_2, window_bounds = array<i64: 8, 1>}, {transform_indices = @transform_3, window_bounds = array<i64: 8, 512>}]} {
    %c0 = arith.constant 0 : index
    %c0_0 = arith.constant 0 : index
    %0 = vector.load %arg2[%c0, %c0_0] : memref<8x2xf32, #tpu.memory_space<vmem>>, vector<8x1xf32>
    %c0_1 = arith.constant 0 : index
    %c0_2 = arith.constant 0 : index
    %1 = vector.load %arg1[%c0_1, %c0_2] : memref<2x512xf32, #tpu.memory_space<vmem>>, vector<1x512xf32>
    %2 = vector.broadcast %0 : vector<8x1xf32> to vector<8x512xf32>
    %3 = vector.broadcast %1 : vector<1x512xf32> to vector<8x512xf32>
    %4 = arith.mulf %2, %3 : vector<8x512xf32>
    %c0_3 = arith.constant 0 : index
    %c1 = arith.constant 1 : index
    %5 = vector.load %arg2[%c0_3, %c1] : memref<8x2xf32, #tpu.memory_space<vmem>>, vector<8x1xf32>
    %c1_4 = arith.constant 1 : index
    %c0_5 = arith.constant 0 : index
    %6 = vector.load %arg1[%c1_4, %c0_5] : memref<2x512xf32, #tpu.memory_space<vmem>>, vector<1x512xf32>
    %7 = vector.broadcast %5 : vector<8x1xf32> to vector<8x512xf32>
    %8 = vector.broadcast %6 : vector<1x512xf32> to vector<8x512xf32>
    %9 = arith.mulf %7, %8 : vector<8x512xf32>
    %10 = arith.addf %4, %9 : vector<8x512xf32>
    %c0_6 = arith.constant 0 : index
    %c0_7 = arith.constant 0 : index
    %11 = vector.load %arg3[%c0_6, %c0_7] : memref<8x1xf32, #tpu.memory_space<vmem>>, vector<8x1xf32>
    %12 = vector.broadcast %11 : vector<8x1xf32> to vector<8x512xf32>
    %13 = arith.addf %10, %12 : vector<8x512xf32>
    %cst = arith.constant 0.000000e+00 : f32
    %14 = vector.broadcast %cst : f32 to vector<8x512xf32>
    %15 = arith.maximumf %13, %14 : vector<8x512xf32>
    %c0_8 = arith.constant 0 : index
    %c0_9 = arith.constant 0 : index
    %16 = vector.load %arg4[%c0_8, %c0_9] : memref<8x512xf32, #tpu.memory_space<vmem>>, vector<8x512xf32>
    tpu.vector_store %arg4[%c0_8, %c0_9], %15 {strides = array<i32>} : memref<8x512xf32, #tpu.memory_space<vmem>>, vector<8x512xf32>,
    return
  }
  func.func @transform_0(%arg0: i32) -> (i32, i32) {
    %c0_i32 = arith.constant 0 : i32
    %c0_i32_0 = arith.constant 0 : i32
    return %c0_i32, %arg0 : i32, i32
  }
  func.func @transform_1(%arg0: i32) -> (i32, i32) {
    %c0_i32 = arith.constant 0 : i32
    %c0_i32_0 = arith.constant 0 : i32
    %c0_i32_1 = arith.constant 0 : i32
    return %c0_i32, %c0_i32_0 : i32, i32
  }
  func.func @transform_2(%arg0: i32) -> (i32, i32) {
    %c0_i32 = arith.constant 0 : i32
    %c0_i32_0 = arith.constant 0 : i32
    %c0_i32_1 = arith.constant 0 : i32
    return %c0_i32, %c0_i32_0 : i32, i32
  }
  func.func @transform_3(%arg0: i32) -> (i32, i32) {
    %c0_i32 = arith.constant 0 : i32
    %c0_i32_0 = arith.constant 0 : i32
    return %c0_i32, %arg0 : i32, i32
  }
}

</mosaic_0001>

<bundles_post_ra>
// kernel: linear_noise_relu.1
= control target key start
LH: loop header
LB: loop body
LE: loop exit
PB: predicated region body
PF: predicated region fallthrough
CT: control target
= control target key end

     0   :  { %8 = vsyncpa [#allocation3], 0  ;;  %s548_s0 = inlined_call_operand.vmem [shape: f32[2,1024], index: 0, kind: input, shape index: {}]   ;;  %s549_s1 = inlined_call_operand.vmem [shape: f32[8,2], index: 1, kind: input, shape index: {}]   ;;  %s550_s2 = inlined_call_operand.vmem [shape: f32[8,1], index: 2, kind: input, shape index: {}]   ;;  %s551_s3 = inlined_call_operand.hbm [shape: f32[8,1024], index: 3, kind: output, shape index: {}]  }
   0x1   :  { %10 = vsyncpa [#allocation3 + $0x1], 0  ;;  %s454_s12 = smov 0   ;;  %s456_s13 = smov 0  }
   0x2   :  { %s458_s14 = smov 0   ;;  %s460_s15 = smov 0  }
   0x3 LB: > { %s475_s16 = sadd.s32 4294967295, %s430_s15   ;;  %s309_s17 = sadd.s32 4294967294, %s430_s15   ;;  %s430_s15 = sphi %s460_s15, %s557_s15   ;;  %s426_s14 = sphi %s458_s14, %s556_s14   ;;  %s422_s13 = sphi %s456_s13, %s555_s13   ;;  %s418_s12 = sphi %s454_s12, %s554_s12  }
   0x4   : > { %s479_s18 = sadd.s32 1, %s430_s15   ;;  %s91_s19 = sadd.s32 1, %s426_s14 }
   0x5   : > { %s88_s20 = ssub.s32 %s430_s15, %s479_s18  ;;  %p101_p0 = scmp.ne.s32.totalorder %s426_s14, %s422_s13 }
   0x6   : > { %p89_p1 = scmp.eq.s32.totalorder %s88_s20, 0  ;;  %p102_p2 = scmp.eq.s32.totalorder %s475_s16, 1 }
   0x7   : > { %p107_p3 = scmp.ne.s32.totalorder %s422_s13, %s418_s12  ;;  %p108_p4 = scmp.eq.s32.totalorder %s309_s17, 1 }
   0x8   : > { %s490_s21 = scalar_select %p89_p1, %s426_s14, %s91_s19  }
   0x9   : > { %p492_p5 = por %p102_p2, %p101_p0  ;;  %p496_p6 = por %p108_p4, %p107_p3 }
   0xa   : > { %p312_p7 = scmp.ge.s32.totalorder %s430_s15, 1  ;;  %p141_p8 = scmp.lt.s32.totalorder %s430_s15, 3 }
   0xc   : > { %p142_p9 = pnand %p312_p7, %p141_p8 }
   0xd   : > { %s314_s28 = sshll.u32 (!%p142_p9), %s475_s16, 2  ;;  %s162_s6 = sand.u32 (!%p142_p9), 1, %s422_s13  }
   0xe   : > { %145 = sbr.rel (%p142_p9) target bundleno = 159 (0x9f), region = 32  ;;  %p166_p10 = scmp.lt.s32.totalorder (!%p142_p9), %s314_s28, 7 }
   0xf   : > { %s313_s7 = sshll.u32 (!%p142_p9), %s162_s6, 5  ;;  %s322_s8 = sshll.u32 (!%p142_p9), %s475_s16, 5 }
  0x10   : > { %s245_s11 = scalar_lea.hbm (!%p142_p9), %s551_s3, %s322_s8  ;;  %s164_s17 = scalar_lea.vmem (!%p142_p9), [#allocation2], %s313_s7 }
  0x11   : > { %s247_s16 = sshll.u32 (!%p142_p9), %s164_s17, 4  ;;  %s249_s19 = sshll.u32 (!%p142_p9), %s245_s11, 4  ;;  %s248_s16 = int_to_ptr.vmem [resolvable:$true] %s247_s16  ;;  %s250_s19 = int_to_ptr.hbm [resolvable:$true] %s249_s19 }
  0x12   : > { %s234_s20 = scalar_lea.sflag (!%p142_p9), [#allocation3], %s162_s6  ;;  %s382_s24 = sshra.s32 (!%p142_p9), %s250_s19, 4  ;;  %s383_s24 = int_to_ptr.hbm [resolvable:$true] %s382_s24 }
  0x13   : > { %v172_v0 = vld [vmem:[%s549_s1] sm:$0xff]  ;;  %v432_v2 = vmov 0   ;;  %v433_v3 = vmov 1   ;;  %s559_s28 = smov (!%p166_p10, %s314_s28), 7  ;;  %s384_s25 = scalar_lea.hbm %s383_s24, 32 }
  0x14   : > { %v215_v1 = vld [vmem:[%s550_s2] sm:$0xff]  ;;  %364 = vset.pattern.permute.xlu0 %v432_v2  ;;  %366 = vset.pattern.permute.xlu1 %v432_v2  ;;  %s315_s29 = sshll.u32 %s559_s28, 1  ;;  %p385_p11 = scmp.ne.s32.totalorder %s383_s24, %s384_s25 }
  0x15   : > { %176 = vperm.xlu0 %364, %v172_v0   ;;  %218 = vperm.xlu1 %366, %v215_v1   ;;  %s169_s5 = scalar_lea.vmem %s548_s0, %s315_s29  ;;  %s388_s28 = scalar_lea.hbm %s551_s3, 64 }
  0x16   : > { %v173_v5 = vld [vmem:[%s169_s5] ss:$2 sm:$0xf]  ;;  %v316_v6 = vld [vmem:[%s169_s5 + $0x1] ss:$2 sm:$0xf]  ;;  %p386_p12 = pnand %p385_p11, %p492_p5  ;;  %p389_p0 = scmp.lt.s32.totalorder %s383_s24, %s551_s3 }
  0x17   : > { %v180_v7 = vperm.slane %v173_v5, 0  ;;  %v181_v8 = vperm.slane %v173_v5, 1  ;;  %v182_v9 = vperm.slane %v173_v5, 2  ;;  %v183_v10 = vperm.slane %v173_v5, 3  ;;  %p390_p1 = scmp.lt.s32.totalorder %s388_s28, %s384_s25 }
  0x18   : > { %v199_v11 = vperm.slane %v316_v6, 0  ;;  %v200_v12 = vperm.slane %v316_v6, 1  ;;  %v201_v13 = vperm.slane %v316_v6, 2  ;;  %v202_v14 = vperm.slane %v316_v6, 3  ;;  %p387_p13 = pneg %p386_p12 }
  0x19   : > { %p391_p2 = por %p390_p1, %p389_p0 }
  0x1b   : > { %p392_p3 = pnand %p391_p2, %p387_p13 }
  0x1d   : > { %365 = vset.pattern.permute.xlu0 %v433_v3 }
  0x1e   : > { %195 = vperm.xlu0 %365, %v172_v0  }
  0x26   : > { %367 = vset.pattern.permute.xlu0 %v432_v2 }
  0x87   : > { %v177_v4 = vpop.permute.xlu0 %176  ;;  %v219_v24 = vpop.permute.xlu1 %218 }
  0x88   : > { %v188_v15 = vmul.f32 %v180_v7, %v177_v4  ;;  %v189_v16 = vmul.f32 %v181_v8, %v177_v4  ;;  %v190_v17 = vmul.f32 %v182_v9, %v177_v4  ;;  %v191_v18 = vmul.f32 %v183_v10, %v177_v4 }
  0x90   : > { %v196_v19 = vpop.permute.xlu0 %195 }
  0x91   : > { %v207_v20 = vmul.f32 %v199_v11, %v196_v19  ;;  %v208_v21 = vmul.f32 %v200_v12, %v196_v19  ;;  %v209_v22 = vmul.f32 %v201_v13, %v196_v19  ;;  %v210_v23 = vmul.f32 %v202_v14, %v196_v19 }
  0x93   : > { %v211_v25 = vadd.f32 %v207_v20, %v188_v15  ;;  %v212_v26 = vadd.f32 %v208_v21, %v189_v16  ;;  %v213_v27 = vadd.f32 %v209_v22, %v190_v17  ;;  %v214_v28 = vadd.f32 %v210_v23, %v191_v18 }
  0x95   : > { %v221_v29 = vadd.f32 %v219_v24, %v211_v25  ;;  %v222_v30 = vadd.f32 %v219_v24, %v212_v26  ;;  %v223_v31 = vadd.f32 %v219_v24, %v213_v27  ;;  %v224_v32 = vadd.f32 %v219_v24, %v214_v28 }
  0x97   : > { %v225_v33 = vmax.f32 %v221_v29, 0.0  ;;  %v226_v34 = vmax.f32 %v222_v30, 0.0  ;;  %v227_v35 = vmax.f32 %v223_v31, 0.0  ;;  %v228_v36 = vmax.f32 %v224_v32, 0.0 }
  0x99   : > { %229 = vst [vmem:[%s164_s17] sm:$0xff] %v225_v33 }
  0x9a   : > { %230 = vst [vmem:[%s164_s17 + $0x8] sm:$0xff] %v226_v34 }
  0x9b   : > { %231 = vst [vmem:[%s164_s17 + $0x10] sm:$0xff] %v227_v35 }
  0x9c   : > { %232 = vst [vmem:[%s164_s17 + $0x18] sm:$0xff] %v228_v36 }
  0x9d   : > { %395 = shalt.err (!%p392_p3)
}
  0x9e   : > { %323 = dma.vmem_to_hbm [thread:$0]  (%p492_p5), %s248_s16, 512, %s250_s19, %s234_s20  }
  0x9f PF: > { %p329_p4 = scmp.ge.s32.totalorder %s430_s15, 2  ;;  %s261_s4 = sand.u32 1, %s418_s12  }
  0xa0   : > { %s262_s5 = scalar_lea.sflag [#allocation3], %s261_s4 }
  0xa1   : > { %p326_p7 = pnand %p329_p4, %p496_p6 }
  0xa3   : > { %p327_p8 = pneg %p326_p7 }
  0xa5   : > { %413 = dma.done.wait (%p327_p8), %s262_s5, 512  }
  0xa6   : > { %415 = vsyncadd (%p327_p8), %s262_s5, 4294966784  ;;  %p13_p9 = scmp.ge.s32.totalorder %s479_s18, 4   ;;  %s554_s12 = smov %s422_s13 }
  0xa7   : > { %s555_s13 = smov %s426_s14  ;;  %s556_s14 = smov %s490_s21 }
  0xa8   : > { %s557_s15 = smov %s479_s18  ;;  %15 = sbr.rel (!%p13_p9) target bundleno = 3 (0x3), region = 68 }
  0xad   :  { %268 = vsyncpa [#allocation3], 1 }
  0xae   :  { %270 = vsyncpa [#allocation3 + $0x1], 1 }

</bundles_post_ra>
